<compile_context>
chip_gen: v7x
topology: tpu7x:2x2x1
jax: 0.10.0
libtpu: 0.0.40
codegen_flags: <defaults>
</compile_context>

<pallas_src>
import functools

import jax
import jax.numpy as jnp
from jax.experimental import pallas as pl
from jax.experimental.pallas import tpu as pltpu

_VMEM_LIMIT_BYTES = 48 * 1024 * 1024   # explicit scoped-VMEM cap (fits v7x's 64 MiB)
_MAX_TILE_BYTES = 4 * 1024 * 1024      # per x-tile in the two-pass path
_FUSED_SLAB_BYTES = 6 * 1024 * 1024    # per-batch (C, HW) slab threshold for 1-pass


# --------------------------- Fused single-pass path -------------------------
def _fused_kernel(x_ref, w1_ref, w2_ref, o_ref, *, inv_hw):
    # x_ref/o_ref: (1, C, HW)   w1_ref: (C_r, C)   w2_ref: (C, C_r)
    x = x_ref[...]                                                   # (1, C, HW)
    # Global average pool: lane reduction per channel, accumulated in f32,
    # scaled by 1/HW exactly once.
    pooled = jnp.sum(x.astype(jnp.float32), axis=-1, keepdims=True)[0] * inv_hw  # (C, 1)
    # Excitation on column vectors (C on sublanes throughout -> no relayouts):
    #   h = relu(W1 @ pooled);  gate = sigmoid(W2 @ h)
    h = jnp.maximum(
        jnp.dot(w1_ref[...], pooled, preferred_element_type=jnp.float32), 0.0)   # (C_r, 1)
    gate = jax.nn.sigmoid(
        jnp.dot(w2_ref[...], h, preferred_element_type=jnp.float32))             # (C, 1)
    # Channel-wise rescale: per-sublane scalar broadcast along lanes.
    o_ref[...] = (x * gate[None].astype(x.dtype)).astype(o_ref.dtype)


def _se_fused(x_flat, w1, w2):
    b, c, hw = x_flat.shape
    c_r = w1.shape[0]
    return pl.pallas_call(
        functools.partial(_fused_kernel, inv_hw=1.0 / float(hw)),
        out_shape=jax.ShapeDtypeStruct((b, c, hw), x_flat.dtype),
        grid=(b,),
        in_specs=[
            pl.BlockSpec((1, c, hw), lambda i: (i, 0, 0)),   # x slab per batch
            pl.BlockSpec((c_r, c), lambda i: (0, 0)),        # W1 resident
            pl.BlockSpec((c, c_r), lambda i: (0, 0)),        # W2 resident
        ],
        out_specs=pl.BlockSpec((1, c, hw), lambda i: (i, 0, 0)),
        compiler_params=pltpu.CompilerParams(
            dimension_semantics=("parallel",),
            vmem_limit_bytes=_VMEM_LIMIT_BYTES),
    )(x_flat, w1, w2)


# ------------------- Two-pass path (large feature maps) ---------------------
def _pool_kernel(x_ref, sum_ref, *, hw, hw_tile):
    # x_ref: (1, C, hw_tile)   sum_ref: (1, C, 1) f32, output used as accumulator.
    t = pl.program_id(1)

    @pl.when(t == 0)
    def _():
        sum_ref[...] = jnp.zeros_like(sum_ref)

    x32 = x_ref[...].astype(jnp.float32)
    if hw % hw_tile != 0:
        # Tail tile: mask out-of-bounds lanes (Pallas edge blocks hold garbage
        # there) before accumulating, so no jnp.pad copy of x is ever needed.
        col = jax.lax.broadcasted_iota(jnp.int32, x32.shape, 2)
        x32 = jnp.where(col + t * hw_tile < hw, x32, 0.0)
    sum_ref[...] += jnp.sum(x32, axis=-1, keepdims=True)


def _excite_kernel(sum_ref, w1_ref, w2_ref, gate_ref, *, inv_hw):
    # sum_ref/gate_ref: (1, C, 1)   w1_ref: (C_r, C)   w2_ref: (C, C_r)
    pooled = sum_ref[...][0] * inv_hw                                # (C, 1) mean
    h = jnp.maximum(
        jnp.dot(w1_ref[...], pooled, preferred_element_type=jnp.float32), 0.0)
    g = jax.nn.sigmoid(
        jnp.dot(w2_ref[...], h, preferred_element_type=jnp.float32))
    gate_ref[...] = g[None]


def _scale_kernel(gate_ref, x_ref, o_ref):
    # gate_ref: (1, C, 1) resident per batch; x_ref/o_ref: (1, C, hw_tile).
    o_ref[...] = (x_ref[...] * gate_ref[...].astype(x_ref.dtype)).astype(o_ref.dtype)


def _pick_hw_tile(hw, c, itemsize):
    """HW tile in lanes: multiple of 128 (~_MAX_TILE_BYTES) or the full HW."""
    lanes = (_MAX_TILE_BYTES // max(1, c * itemsize)) // 128 * 128
    lanes = max(128, lanes)
    return hw if lanes >= hw else lanes


def _se_two_pass(x_flat, w1, w2, hw_tile):
    b, c, hw = x_flat.shape
    c_r = w1.shape[0]
    n_t = pl.cdiv(hw, hw_tile)

    # Pass 1: stream x once, produce raw f32 channel sums (B, C, 1).
    sums = pl.pallas_call(
        functools.partial(_pool_kernel, hw=hw, hw_tile=hw_tile),
        out_shape=jax.ShapeDtypeStruct((b, c, 1), jnp.float32),
        grid=(b, n_t),
        in_specs=[pl.BlockSpec((1, c, hw_tile), lambda i, t: (i, 0, t))],
        out_specs=pl.BlockSpec((1, c, 1), lambda i, t: (i, 0, 0)),
        compiler_params=pltpu.CompilerParams(
            dimension_semantics=("parallel", "arbitrary"),
            vmem_limit_bytes=_VMEM_LIMIT_BYTES),
    )(x_flat)

    # Tiny per-batch excitation, off the streaming loops (negligible work).
    gate = pl.pallas_call(
        functools.partial(_excite_kernel, inv_hw=1.0 / float(hw)),
        out_shape=jax.ShapeDtypeStruct((b, c, 1), jnp.float32),
        grid=(b,),
        in_specs=[
            pl.BlockSpec((1, c, 1), lambda i: (i, 0, 0)),
            pl.BlockSpec((c_r, c), lambda i: (0, 0)),
            pl.BlockSpec((c, c_r), lambda i: (0, 0)),
        ],
        out_specs=pl.BlockSpec((1, c, 1), lambda i: (i, 0, 0)),
        compiler_params=pltpu.CompilerParams(
            dimension_semantics=("arbitrary",),
            vmem_limit_bytes=_VMEM_LIMIT_BYTES),
    )(sums, w1, w2)

    # Pass 2: out = x * gate (gate stays VMEM-resident per batch).  The tail
    # tile's out-of-bounds lanes are never written, so no padding is needed.
    out = pl.pallas_call(
        _scale_kernel,
        out_shape=jax.ShapeDtypeStruct((b, c, hw), x_flat.dtype),
        grid=(b, n_t),
        in_specs=[
            pl.BlockSpec((1, c, 1), lambda i, t: (i, 0, 0)),
            pl.BlockSpec((1, c, hw_tile), lambda i, t: (i, 0, t)),
        ],
        out_specs=pl.BlockSpec((1, c, hw_tile), lambda i, t: (i, 0, t)),
        compiler_params=pltpu.CompilerParams(
            dimension_semantics=("parallel", "parallel"),
            vmem_limit_bytes=_VMEM_LIMIT_BYTES),
    )(gate, x_flat)
    return out


# --------------------------------- Wrapper -----------------------------------
@functools.partial(jax.jit, static_argnames=("hw_tile", "force_two_pass"))
def se_block(x, w1, w2, *, hw_tile=None, force_two_pass=False):
    """SEBlock forward.  x: (B, C, H, W); w1: (C//r, C); w2: (C, C//r).

    Weights use the PyTorch nn.Linear (out_features, in_features) layout.
    NCHW is handled natively (no transposes); (H, W) is collapsed to HW,
    which is a free view under jit.
    """
    b, c, h, w = x.shape
    hw = h * w
    x_flat = x.reshape(b, c, hw)
    slab_bytes = c * hw * x.dtype.itemsize
    if force_two_pass or slab_bytes > _FUSED_SLAB_BYTES:
        tile = hw_tile if hw_tile is not None else _pick_hw_tile(hw, c, x.dtype.itemsize)
        out_flat = _se_two_pass(x_flat, w1, w2, tile)
    else:
        out_flat = _se_fused(x_flat, w1, w2)
    return out_flat.reshape(b, c, h, w)


def se_block_reference(x, w1, w2):
    """Pure-JAX reference mirroring the PyTorch forward (f32 math)."""
    x32 = x.astype(jnp.float32)
    y = jnp.mean(x32, axis=(2, 3))                     # (B, C)
    y = jnp.maximum(y @ w1.T, 0.0)                     # (B, C//r)
    y = jax.nn.sigmoid(y @ w2.T)                       # (B, C)
    return (x32 * y[:, :, None, None]).astype(x.dtype)


if __name__ == "__main__":
    # Module config: channels divisible by reduction (default 16).
    B, C, H, W = 2, 32, 16, 16
    reduction = 16
    C_r = C // reduction  # 2

    key = jax.random.PRNGKey(0)
    kx, kw1, kw2 = jax.random.split(key, 3)

    x = jax.random.normal(kx, (B, C, H, W), dtype=jnp.float32)
    # PyTorch nn.Linear weight layout: (out_features, in_features).
    w1 = jax.random.normal(kw1, (C_r, C), dtype=jnp.float32) * 0.1
    w2 = jax.random.normal(kw2, (C, C_r), dtype=jnp.float32) * 0.1

    ref = se_block_reference(x, w1, w2)

    # 1) Default dispatch -> fused single-pass path (slab fits VMEM).
    out = jax.block_until_ready(se_block(x, w1, w2))
    assert out.shape == (B, C, H, W)
    assert jnp.allclose(out, ref, atol=1e-5, rtol=1e-5), "fused path mismatch"

    # 2) Forced two-pass path with small tiles (exercises the streaming passes).
    out2 = jax.block_until_ready(se_block(x, w1, w2, force_two_pass=True, hw_tile=128))
    assert jnp.allclose(out2, ref, atol=1e-5, rtol=1e-5), "two-pass mismatch"

    # 3) Two-pass path with HW not a multiple of the tile (tail-tile masking).
    x14 = jax.random.normal(kx, (B, C, 14, 14), dtype=jnp.float32)
    ref14 = se_block_reference(x14, w1, w2)
    out14 = jax.block_until_ready(se_block(x14, w1, w2, force_two_pass=True, hw_tile=128))
    assert jnp.allclose(out14, ref14, atol=1e-5, rtol=1e-5), "masked tail mismatch"

    # 4) bf16 I/O (f32 accumulation inside the kernel).
    xb = x.astype(jnp.bfloat16)
    refb = se_block_reference(xb, w1, w2)
    outb = jax.block_until_ready(se_block(xb, w1, w2))
    assert outb.dtype == jnp.bfloat16
    assert jnp.allclose(outb.astype(jnp.float32), refb.astype(jnp.float32),
                        atol=5e-2, rtol=5e-2), "bf16 mismatch"

    print("KERNEL_OK")
</pallas_src>

<mosaic_0001>
module attributes {stable_mosaic.version = 11 : i64} {
  func.func @_fused_kernel(%arg0: i32, %arg1: memref<1x32x256xf32, #tpu.memory_space<vmem>>, %arg2: memref<2x32xf32, #tpu.memory_space<vmem>>, %arg3: memref<32x2xf32, #tpu.memory_space<vmem>>, %arg4: memref<1x32x256xf32, #tpu.memory_space<vmem>>) attributes {dimension_semantics = [#tpu.dimension_semantics<parallel>], iteration_bounds = array<i64: 2>, scalar_prefetch = 0 : i64, scratch_operands = 0 : i64, tpu.core_type = #tpu.core_type<tc>, window_params = [{transform_indices = @transform_0, window_bounds = array<i64: 1, 32, 256>}, {pipeline_mode = #tpu.pipeline_mode<synchronous>, transform_indices = @transform_1, window_bounds = array<i64: 2, 32>}, {pipeline_mode = #tpu.pipeline_mode<synchronous>, transform_indices = @transform_2, window_bounds = array<i64: 32, 2>}, {transform_indices = @transform_3, window_bounds = array<i64: 1, 32, 256>}]} {
    %c0 = arith.constant 0 : index
    %c0_0 = arith.constant 0 : index
    %c0_1 = arith.constant 0 : index
    %0 = vector.load %arg1[%c0, %c0_0, %c0_1] : memref<1x32x256xf32, #tpu.memory_space<vmem>>, vector<1x32x256xf32>
    %cst = arith.constant dense<0.000000e+00> : vector<1x32xf32>
    %1 = vector.multi_reduction <add>, %0, %cst [2] : vector<1x32x256xf32> to vector<1x32xf32>
    %2 = vector.shape_cast %1 : vector<1x32xf32> to vector<1x32x1xf32>
    %3 = vector.shape_cast %2 : vector<1x32x1xf32> to vector<32x1xf32>
    %cst_2 = arith.constant 3.906250e-03 : f32
    %4 = vector.broadcast %cst_2 : f32 to vector<32x1xf32>
    %5 = arith.mulf %3, %4 : vector<32x1xf32>
    %c0_3 = arith.constant 0 : index
    %c0_4 = arith.constant 0 : index
    %6 = vector.load %arg2[%c0_3, %c0_4] : memref<2x32xf32, #tpu.memory_space<vmem>>, vector<2x32xf32>
    %cst_5 = arith.constant dense<0.000000e+00> : vector<2x1xf32>
    %7 = tpu.matmul %6, %5, %cst_5 {dimension_numbers = #tpu.dot_dimension_numbers<[1], [0], [0], [1], [0, 0, 1, 1], [], []>} : vector<2x32xf32>, vector<32x1xf32>, vector<2x1xf32> -> vector<2x1xf32>
    %cst_6 = arith.constant 0.000000e+00 : f32
    %8 = vector.broadcast %cst_6 : f32 to vector<2x1xf32>
    %9 = arith.maximumf %7, %8 : vector<2x1xf32>
    %c0_7 = arith.constant 0 : index
    %c0_8 = arith.constant 0 : index
    %10 = vector.load %arg3[%c0_7, %c0_8] : memref<32x2xf32, #tpu.memory_space<vmem>>, vector<32x2xf32>
    %cst_9 = arith.constant dense<0.000000e+00> : vector<32x1xf32>
    %11 = tpu.matmul %10, %9, %cst_9 {dimension_numbers = #tpu.dot_dimension_numbers<[1], [0], [0], [1], [0, 0, 1, 1], [], []>} : vector<32x2xf32>, vector<2x1xf32>, vector<32x1xf32> -> vector<32x1xf32>
    %12 = arith.negf %11 : vector<32x1xf32>
    %13 = math.exp %12 : vector<32x1xf32>
    %cst_10 = arith.constant 1.000000e+00 : f32
    %14 = vector.broadcast %cst_10 : f32 to vector<32x1xf32>
    %15 = arith.addf %14, %13 : vector<32x1xf32>
    %16 = arith.divf %14, %15 : vector<32x1xf32>
    %17 = vector.shape_cast %16 : vector<32x1xf32> to vector<1x32x1xf32>
    %18 = vector.broadcast %17 : vector<1x32x1xf32> to vector<1x32x256xf32>
    %19 = arith.mulf %0, %18 : vector<1x32x256xf32>
    %c0_11 = arith.constant 0 : index
    %c0_12 = arith.constant 0 : index
    %c0_13 = arith.constant 0 : index
    %20 = vector.load %arg4[%c0_11, %c0_12, %c0_13] : memref<1x32x256xf32, #tpu.memory_space<vmem>>, vector<1x32x256xf32>
    tpu.vector_store %arg4[%c0_11, %c0_12, %c0_13], %19 {strides = array<i32>} : memref<1x32x256xf32, #tpu.memory_space<vmem>>, vector<1x32x256xf32>,
    return
  }
  func.func @transform_0(%arg0: i32) -> (i32, i32, i32) {
    %c0_i32 = arith.constant 0 : i32
    %c0_i32_0 = arith.constant 0 : i32
    %c0_i32_1 = arith.constant 0 : i32
    return %arg0, %c0_i32, %c0_i32_0 : i32, i32, i32
  }
  func.func @transform_1(%arg0: i32) -> (i32, i32) {
    %c0_i32 = arith.constant 0 : i32
    %c0_i32_0 = arith.constant 0 : i32
    %c0_i32_1 = arith.constant 0 : i32
    return %c0_i32, %c0_i32_0 : i32, i32
  }
  func.func @transform_2(%arg0: i32) -> (i32, i32) {
    %c0_i32 = arith.constant 0 : i32
    %c0_i32_0 = arith.constant 0 : i32
    %c0_i32_1 = arith.constant 0 : i32
    return %c0_i32, %c0_i32_0 : i32, i32
  }
  func.func @transform_3(%arg0: i32) -> (i32, i32, i32) {
    %c0_i32 = arith.constant 0 : i32
    %c0_i32_0 = arith.constant 0 : i32
    %c0_i32_1 = arith.constant 0 : i32
    return %arg0, %c0_i32, %c0_i32_0 : i32, i32, i32
  }
}

</mosaic_0001>

<bundles_post_ra>
// kernel: se_block.1
= control target key start
LH: loop header
LB: loop body
LE: loop exit
PB: predicated region body
PF: predicated region fallthrough
CT: control target
= control target key end

     0   :  { %s612_s12 = smov 0   ;;  %s683_s0 = inlined_call_operand.vmem [shape: f32[2,32,256], index: 0, kind: input, shape index: {}]   ;;  %s684_s1 = inlined_call_operand.vmem [shape: f32[2,32], index: 1, kind: input, shape index: {}]   ;;  %s685_s2 = inlined_call_operand.vmem [shape: f32[32,2], index: 2, kind: input, shape index: {}]   ;;  %s686_s3 = inlined_call_operand.vmem [shape: f32[2,32,256], index: 3, kind: output, shape index: {}]  }
   0x1 LB: > { %s492_s13 = sadd.s32 4294967295, %s586_s12   ;;  %p496_p0 = scmp.ge.s32.totalorder %s586_s12, 1  ;;  %s586_s12 = sphi %s612_s12, %s13_s12  }
   0x2   : > { %p137_p1 = scmp.lt.s32.totalorder %s586_s12, 3 }
   0x4   : > { %p138_p2 = pnand %p496_p0, %p137_p1 }
   0x5   : > { %p161_p3 = scmp.lt.s32.totalorder (!%p138_p2), %s492_s13, 1  ;;  %v588_v12 = vmov (!%p138_p2), 0.0|0.0   ;;  %vm589_vm0 = vmmov (!%p138_p2), 0   ;;  %v590_v13 = vmov (!%p138_p2), 0.0   ;;  %v195_v24 = vld [vmem:[%s684_s1] sm:$0x3] (!%p138_p2) }
   0x6   : > { %141 = sbr.rel (%p138_p2) target bundleno = 771 (0x303), region = 32  ;;  %544 = vmatprep.subr.bf16.mxu0 (!%p138_p2), %v588_v12  ;;  %533 = vmatprep.mubr.msk.f32.mxu0 (!%p138_p2), %vm589_vm0, %v590_v13  ;;  %vm196_vm1 = vcmask (!%p138_p2), 261120   ;;  %v271_v25 = vld [vmem:[%s685_s2] sm:$0xff] (!%p138_p2)  ;;  %vm275_vm2 = vcmask (!%p138_p2), 15360   ;;  %vm288_vm3 = vcmask (!%p138_p2), 1041408   ;;  %v272_v29 = vld [vmem:[%s685_s2 + $0x8] sm:$0xff] (!%p138_p2) }
   0x7   : > { %538 = vmatprep.mubr.msk.f32.mxu1 (!%p138_p2), %vm275_vm2, %v271_v25  ;;  %v273_v30 = vld [vmem:[%s685_s2 + $0x10] sm:$0xff] (!%p138_p2)  ;;  %v274_v31 = vld [vmem:[%s685_s2 + $0x18] sm:$0xff] (!%p138_p2)  ;;  %v591_v32 = vmov (!%p138_p2), 0  }
   0x8   : > { %563 = vset.pattern.permute.xlu1 (!%p138_p2), %v591_v32  ;;  %562 = vset.pattern.permute.xlu0 (!%p138_p2), %v591_v32 }
   0xd   : > { %s688_s13 = smov (!%p161_p3, %s492_s13), 1 }
   0xe   : > { %s513_s14 = sshll.u32 %s688_s13, 6 }
   0xf   : > { %s165_s17 = scalar_lea.vmem %s683_s0, %s513_s14  ;;  %s170_s30 = scalar_lea.vmem %s686_s3, %s513_s14 }
  0x10   : > { %v628_v0 = vld [vmem:[%s165_s17 + $0x20] sm:$0xff]  ;;  %v630_v1 = vld [vmem:[%s165_s17 + $0x28] sm:$0xff]  ;;  %v638_v5 = vld [vmem:[%s165_s17 + $0x30] sm:$0xff] }
  0x11   : > { %v632_v2 = vld [vmem:[%s165_s17] sm:$0xff]  ;;  %v185_v3 = vadd.f32 %v630_v1, %v628_v0  ;;  %v636_v4 = vld [vmem:[%s165_s17 + $0x8] sm:$0xff]  ;;  %v640_v6 = vld [vmem:[%s165_s17 + $0x38] sm:$0xff] }
  0x12   : > { %v179_v7 = vadd.f32 %v636_v4, %v632_v2  ;;  %v644_v8 = vld [vmem:[%s165_s17 + $0x10] sm:$0xff]  ;;  %v646_v9 = vld [vmem:[%s165_s17 + $0x18] sm:$0xff]  ;;  %v188_v10 = vadd.f32 %v640_v6, %v638_v5 }
  0x13   : > { %186 = vadd.xlane.f32.xlu1 %v185_v3  ;;  %v182_v11 = vadd.f32 %v646_v9, %v644_v8 }
  0x14   : > { %180 = vadd.xlane.f32.xlu0 %v179_v7 }
  0x17   : > { %189 = vadd.xlane.f32.xlu1 %v188_v10 }
  0x18   : > { %183 = vadd.xlane.f32.xlu0 %v182_v11 }
  0xa0   : > { %v187_v14 = vpop.xlane.xlu1 %186 }
  0xa1   : > { %v181_v15 = vpop.xlane.xlu0 %180  ;;  %v193_v20 = vmul.f32 0.00390625, %v187_v14 }
  0xa2   : > { %v191_v18 = vmul.f32 0.00390625, %v181_v15 }
  0xa4   : > { %v190_v16 = vpop.xlane.xlu1 %189 }
  0xa5   : > { %v184_v17 = vpop.xlane.xlu0 %183  ;;  %v194_v21 = vmul.f32 0.00390625, %v190_v16 }
  0xa6   : > { %v192_v19 = vmul.f32 0.00390625, %v184_v17 }
  0xa7   : > { %v548_v23 = vpack.c.bf16 %v194_v21, %v193_v20 }
  0xa8   : > { %v545_v22 = vpack.c.bf16 %v192_v19, %v191_v18 }
  0xaa   : > { %546 = vmatpush3.bf16.msra.mxu0 %v545_v22 }
  0xab   : > { %547 = vmatprep.subr.bf16.mxu0 %v588_v12 }
  0xae   : > { %549 = vmatpush3.bf16.msra.mxu0 %v548_v23 }
  0xb1   : > { %534 = vmatmul.mubr.msk.f32.vlgmr.msra.gmra.mrb[0].mxu0 %vm196_vm1, %v195_v24 }
 0x184   : > { %v266_v26 = vpop.f32.mrb[0].mxu0 }
 0x185   : > { %v270_v27 = vmax.f32 %v266_v26, 0.0  ;;  %v535_v28 = vpop.f32.mrb[1].mxu0 }
 0x187   : > { %536 = vmatprep.subr.msk.mxu1 %vm288_vm3, %v270_v27 }
 0x188   : > { %537 = vmatpush3.msk.msra.mxu1 %vm288_vm3, %v270_v27 }
 0x189   : > { %539 = vmatmul.mubr.msk.f32.vlgmr.msra.gmra.mrb[0].mxu1 %vm275_vm2, %v272_v29 }
 0x18a   : > { %541 = vmatprep.mubr.msk.f32.mxu1 %vm275_vm2, %v273_v30 }
 0x18d   : > { %542 = vmatmul.mubr.msk.f32.gmra.mrb[2].mxu1 %vm275_vm2, %v274_v31 }
 0x25c   : > { %v540_v33 = vpop.f32.mrb[0].mxu1 }
 0x25d   : > { %v508_v34 = vmul.f32 -1.442695, %v540_v33  ;;  %v358_v35 = vpop.f32.mrb[1].mxu1 }
 0x25e   : > { %v507_v36 = vmul.f32 -1.442695, %v358_v35 }
 0x25f   : > { %564 = vpow2.f32 %v508_v34 }
 0x260   : > { %566 = vpow2.f32 %v507_v36  ;;  %v543_v37 = vpop.f32.mrb[2].mxu1 }
 0x261   : > { %v510_v38 = vmul.f32 -1.442695, %v543_v37  ;;  %v368_v39 = vpop.f32.mrb[3].mxu1 }
 0x262   : > { %v509_v40 = vmul.f32 -1.442695, %v368_v39 }
 0x263   : > { %568 = vpow2.f32 %v510_v38 }
 0x264   : > { %570 = vpow2.f32 %v509_v40 }
 0x269   : > { %v565_v41 = vpop.eup %564 }
 0x26a   : > { %v567_v42 = vpop.eup %566  ;;  %v390_v43 = vadd.f32 1.0, %v565_v41 }
 0x26b   : > { %v389_v44 = vadd.f32 1.0, %v567_v42 }
 0x26c   : > { %572 = vrcp.f32 %v390_v43 }
 0x26d   : > { %v569_v45 = vpop.eup %568  ;;  %574 = vrcp.f32 %v389_v44 }
 0x26e   : > { %v571_v46 = vpop.eup %570  ;;  %v392_v48 = vadd.f32 1.0, %v569_v45 }
 0x26f   : > { %v391_v47 = vadd.f32 1.0, %v571_v46 }
 0x271   : > { %576 = vrcp.f32 %v391_v47 }
 0x272   : > { %578 = vrcp.f32 %v392_v48 }
 0x276   : > { %v573_v49 = vpop.eup %572 }
 0x277   : > { %v575_v50 = vpop.eup %574  ;;  %408 = vperm.xlu1 %563, %v573_v49  }
 0x278   : > { %403 = vperm.xlu0 %562, %v575_v50  }
 0x27b   : > { %v577_v51 = vpop.eup %576 }
 0x27c   : > { %413 = vperm.xlu1 %563, %v577_v51   ;;  %v579_v52 = vpop.eup %578 }
 0x280   : > { %418 = vperm.xlu1 %563, %v579_v52  }
 0x2f6   : > { %v409_v53 = vpop.permute.xlu1 %408 }
 0x2f7   : > { %v423_v54 = vmul.f32 %v409_v53, %v644_v8  ;;  %v424_v55 = vmul.f32 %v409_v53, %v646_v9  ;;  %v404_v56 = vpop.permute.xlu0 %403 }
 0x2f8   : > { %v421_v57 = vmul.f32 %v404_v56, %v632_v2  ;;  %v422_v58 = vmul.f32 %v404_v56, %v636_v4 }
 0x2f9   : > { %431 = vst [vmem:[%s170_s30 + $0x10] sm:$0xff] %v423_v54  ;;  %432 = vst [vmem:[%s170_s30 + $0x18] sm:$0xff] %v424_v55 }
 0x2fa   : > { %429 = vst [vmem:[%s170_s30] sm:$0xff] %v421_v57  ;;  %430 = vst [vmem:[%s170_s30 + $0x8] sm:$0xff] %v422_v58 }
 0x2fb   : > { %v414_v59 = vpop.permute.xlu1 %413 }
 0x2fc   : > { %v425_v60 = vmul.f32 %v414_v59, %v628_v0  ;;  %v426_v61 = vmul.f32 %v414_v59, %v630_v1 }
 0x2fe   : > { %433 = vst [vmem:[%s170_s30 + $0x20] sm:$0xff] %v425_v60  ;;  %434 = vst [vmem:[%s170_s30 + $0x28] sm:$0xff] %v426_v61 }
 0x2ff   : > { %v419_v62 = vpop.permute.xlu1 %418 }
 0x300   : > { %v427_v63 = vmul.f32 %v419_v62, %v638_v5  ;;  %v428_v3 = vmul.f32 %v419_v62, %v640_v6 }
 0x302   : > { %435 = vst [vmem:[%s170_s30 + $0x30] sm:$0xff] %v427_v63  ;;  %436 = vst [vmem:[%s170_s30 + $0x38] sm:$0xff] %v428_v3 }
 0x303 PF: > { %s13_s12 = sadd.s32 1, %s586_s12  }
 0x304   : > { %p10_p4 = scmp.ge.s32.totalorder %s13_s12, 4  }
 0x306   :  { %12 = sbr.rel (!%p10_p4) target bundleno = 1 (0x1), region = 62 }

</bundles_post_ra>
